<compile_context>
chip_gen: v5e
topology: v5e:2x2
jax: 0.10.0
libtpu: 0.0.40
codegen_flags: <defaults>
</compile_context>

<pallas_src>
import math
from functools import partial

import jax
import jax.numpy as jnp
from jax.experimental import pallas as pl
from jax.experimental.pallas import tpu as pltpu


def _build_pe(d_model: int, max_len: int, dtype=jnp.float32) -> jnp.ndarray:
    """Deterministic sinusoidal table, identical to the torch __init__ buffer."""
    position = jnp.arange(max_len, dtype=jnp.float32)[:, None]            # (max_len, 1)
    div_term = jnp.exp(
        jnp.arange(0, d_model, 2, dtype=jnp.float32) * (-math.log(10000.0) / d_model)
    )                                                                     # (d_model//2,)
    angles = position * div_term                                          # (max_len, d/2)
    pe = jnp.stack([jnp.sin(angles), jnp.cos(angles)], axis=-1)           # interleave
    pe = pe.reshape(max_len, d_model)[:, None, :]                         # (max_len, 1, D)
    return pe.astype(dtype)                                               # pre-cast: no in-kernel convert


# ---------------------------------------------------------------------------
# Kernels
# ---------------------------------------------------------------------------

def _pe_add_kernel_3d(x_ref, pe_ref, o_ref):
    # x_ref: (ts, B, D), pe_ref: (ts, D)  -- only used when B >= 8 and B % 8 == 0
    o_ref[...] = x_ref[...] + pe_ref[...][:, None, :]


def _pe_add_kernel_flat(x_ref, pe_ref, o_ref, *, batch: int):
    # x_ref: (ts, B*D) lane-dense slab, pe_ref: (ts, D)
    pe = pe_ref[...]
    if batch > 1:
        pe = jnp.tile(pe, (1, batch))          # lane-repeat: (ts, D) -> (ts, B*D)
    o_ref[...] = x_ref[...] + pe


# ---------------------------------------------------------------------------
# Wrapper
# ---------------------------------------------------------------------------

def _round_up(v: int, m: int) -> int:
    return -(-v // m) * m


def _round_down(v: int, m: int) -> int:
    return (v // m) * m


def _vmem_capacity_bytes() -> int:
    try:
        info = pltpu.get_tpu_info()
        cap = getattr(info, "vmem_capacity_bytes", None)
        if cap:
            return int(cap)
    except Exception:
        pass
    return 64 << 20  # conservative fallback (v7x per-TC VMEM)


def positional_encoding_forward(
    x: jnp.ndarray,
    pe: jnp.ndarray,
    *,
    tile_rows: int | None = None,
    use_pallas: bool | None = None,
    donate_x: bool = False,
) -> jnp.ndarray:
    """x: (S, B, D); pe: (max_len, 1, D) buffer. Returns x + pe[:S]."""
    S, B, D = x.shape
    max_len = pe.shape[0]
    assert max_len >= S and pe.shape[1] == 1 and pe.shape[2] == D

    # Trivially fusible broadcast add: stay on XLA below the crossover.
    if use_pallas is None:
        use_pallas = x.size >= (1 << 20)
    if not use_pallas:
        return x + pe[:S].astype(x.dtype)

    itemsize = jnp.dtype(x.dtype).itemsize
    sub = 8 * max(1, 4 // itemsize)            # sublane packing: 8 f32, 16 bf16, 32 int8
    lanes = 128

    # Free reshape of the buffer; prefer a table pre-built in the compute dtype.
    pe2d = pe.reshape(max_len, D)
    if pe2d.dtype != x.dtype:
        pe2d = pe2d.astype(x.dtype)

    # Layout decision: lane-dense (S, B*D) unless B is already sublane-friendly.
    flat = not (B >= 8 and B % 8 == 0)
    if flat:
        x_in = x.reshape(S, B * D)             # contiguous, free
        padded_row_bytes = _round_up(B * D, lanes) * itemsize
    else:
        x_in = x
        padded_row_bytes = _round_up(B, sub) * _round_up(D, lanes) * itemsize
    pe_row_bytes = _round_up(D, lanes) * itemsize

    # Per-generation budgets (128 MiB parts get bigger tiles & ceiling).
    vmem_cap = _vmem_capacity_bytes()
    big_vmem = vmem_cap >= (100 << 20)
    target_tile_bytes = (8 << 20) if big_vmem else (4 << 20)
    vmem_ceiling = (64 << 20) if big_vmem else (40 << 20)

    if tile_rows is None:
        ts = _round_down(target_tile_bytes // max(padded_row_bytes, 1), sub)
        ts = max(sub, min(2048, ts))
    else:
        ts = max(sub, _round_down(tile_rows, sub))
    ts = min(ts, max(sub, _round_up(S, sub)))

    # Guarantee >= 2 sequence blocks when possible so ("parallel",) can span 2 TCs.
    while pl.cdiv(S, ts) < 2 and ts > sub:
        ts = max(sub, _round_down(ts // 2, sub))

    grid = (pl.cdiv(S, ts),)

    # Padding-aware, double-buffered resident set: x tile + out tile + pe tile.
    resident = 2 * ts * (2 * padded_row_bytes + pe_row_bytes)
    vmem_limit = int(max(min(32 << 20, vmem_ceiling), min(vmem_ceiling, 2 * resident)))

    extra_kwargs = {}
    if donate_x:
        extra_kwargs["input_output_aliases"] = {0: 0}

    if flat:
        kernel = partial(_pe_add_kernel_flat, batch=B)
        in_specs = [
            pl.BlockSpec((ts, B * D), lambda i: (i, 0)),
            pl.BlockSpec((ts, D), lambda i: (i, 0)),
        ]
        out_specs = pl.BlockSpec((ts, B * D), lambda i: (i, 0))
        out_shape = jax.ShapeDtypeStruct((S, B * D), x.dtype)
    else:
        kernel = _pe_add_kernel_3d
        in_specs = [
            pl.BlockSpec((ts, B, D), lambda i: (i, 0, 0)),
            pl.BlockSpec((ts, D), lambda i: (i, 0)),
        ]
        out_specs = pl.BlockSpec((ts, B, D), lambda i: (i, 0, 0))
        out_shape = jax.ShapeDtypeStruct((S, B, D), x.dtype)

    out = pl.pallas_call(
        kernel,
        out_shape=out_shape,
        grid_spec=pltpu.PrefetchScalarGridSpec(
            num_scalar_prefetch=0,
            grid=grid,
            in_specs=in_specs,
            out_specs=out_specs,
        ),
        compiler_params=pltpu.CompilerParams(
            dimension_semantics=("parallel",),
            vmem_limit_bytes=vmem_limit,
        ),
        **extra_kwargs,
    )(x_in, pe2d)

    return out.reshape(S, B, D) if flat else out


if __name__ == "__main__":
    key = jax.random.PRNGKey(0)
    k1, k2, k3 = jax.random.split(key, 3)

    # Demo 1: small shapes consistent with the module: seq=8, batch=2, d_model=32.
    # Small batch -> lane-dense (S, B*D) path.
    S, B, D = 8, 2, 32
    max_len = 64  # stand-in for 5000; table construction is identical
    x = jax.random.normal(k1, (S, B, D), dtype=jnp.float32)
    pe = _build_pe(D, max_len, dtype=jnp.float32)

    out = jax.block_until_ready(positional_encoding_forward(x, pe, use_pallas=True))
    ref = x + pe[:S]
    assert out.shape == (S, B, D)
    assert jnp.allclose(out, ref, atol=1e-6), "mismatch vs reference (demo 1)"

    # Demo 2: multi-block grid with a partial last block (40 = 16+16+8) and a
    # lane-dense d_model (128); still the flattened path (B=4 < 8).
    S2, B2, D2 = 40, 4, 128
    x2 = jax.random.normal(k2, (S2, B2, D2), dtype=jnp.float32)
    pe2 = _build_pe(D2, max_len, dtype=jnp.float32)
    out2 = jax.block_until_ready(
        positional_encoding_forward(x2, pe2, use_pallas=True, tile_rows=16)
    )
    assert jnp.allclose(out2, x2 + pe2[:S2], atol=1e-6), "mismatch vs reference (demo 2)"

    # Demo 3: sublane-friendly batch (B=8) -> 3-D path, bf16 with pre-cast pe
    # (pe in compute dtype, ts rounded to the bf16 packing multiple of 16).
    S3, B3, D3 = 32, 8, 128
    x3 = jax.random.normal(k3, (S3, B3, D3), dtype=jnp.float32).astype(jnp.bfloat16)
    pe3 = _build_pe(D3, max_len, dtype=jnp.bfloat16)
    out3 = jax.block_until_ready(positional_encoding_forward(x3, pe3, use_pallas=True))
    ref3 = x3 + pe3[:S3]
    assert jnp.allclose(out3.astype(jnp.float32), ref3.astype(jnp.float32), atol=1e-2), \
        "mismatch vs reference (demo 3)"

    print("KERNEL_OK")
</pallas_src>

<mosaic_0001>
module attributes {stable_mosaic.version = 11 : i64} {
  func.func @_pe_add_kernel_flat(%arg0: i32, %arg1: memref<8x64xf32, #tpu.memory_space<vmem>>, %arg2: memref<8x32xf32, #tpu.memory_space<vmem>>, %arg3: memref<8x64xf32, #tpu.memory_space<vmem>>) attributes {dimension_semantics = [#tpu.dimension_semantics<parallel>], iteration_bounds = array<i64: 1>, scalar_prefetch = 0 : i64, scratch_operands = 0 : i64, tpu.core_type = #tpu.core_type<tc>, window_params = [{transform_indices = @transform_0, window_bounds = array<i64: 8, 64>}, {transform_indices = @transform_1, window_bounds = array<i64: 8, 32>}, {transform_indices = @transform_2, window_bounds = array<i64: 8, 64>}]} {
    %c0 = arith.constant 0 : index
    %c0_0 = arith.constant 0 : index
    %0 = vector.load %arg2[%c0, %c0_0] : memref<8x32xf32, #tpu.memory_space<vmem>>, vector<8x32xf32>
    %1 = tpu.concatenate %0, %0 in 1 : vector<8x32xf32>, vector<8x32xf32> -> vector<8x64xf32>
    %c0_1 = arith.constant 0 : index
    %c0_2 = arith.constant 0 : index
    %2 = vector.load %arg1[%c0_1, %c0_2] : memref<8x64xf32, #tpu.memory_space<vmem>>, vector<8x64xf32>
    %3 = arith.addf %2, %1 : vector<8x64xf32>
    %c0_3 = arith.constant 0 : index
    %c0_4 = arith.constant 0 : index
    %4 = vector.load %arg3[%c0_3, %c0_4] : memref<8x64xf32, #tpu.memory_space<vmem>>, vector<8x64xf32>
    tpu.vector_store %arg3[%c0_3, %c0_4], %3 {strides = array<i32>} : memref<8x64xf32, #tpu.memory_space<vmem>>, vector<8x64xf32>,
    return
  }
  func.func @transform_0(%arg0: i32) -> (i32, i32) {
    %c0_i32 = arith.constant 0 : i32
    %c0_i32_0 = arith.constant 0 : i32
    return %arg0, %c0_i32 : i32, i32
  }
  func.func @transform_1(%arg0: i32) -> (i32, i32) {
    %c0_i32 = arith.constant 0 : i32
    %c0_i32_0 = arith.constant 0 : i32
    return %arg0, %c0_i32 : i32, i32
  }
  func.func @transform_2(%arg0: i32) -> (i32, i32) {
    %c0_i32 = arith.constant 0 : i32
    %c0_i32_0 = arith.constant 0 : i32
    return %arg0, %c0_i32 : i32, i32
  }
}

</mosaic_0001>

<bundles_post_ra>
// kernel: tpu_custom_call.1
= control target key start
LH: loop header
LB: loop body
LE: loop exit
PB: predicated region body
PF: predicated region fallthrough
CT: control target
= control target key end

     0   :  { %s93_s0 = inlined_call_operand.vmem [shape: f32[8,64], index: 0, kind: input, shape index: {}]   ;;  %s94_s1 = inlined_call_operand.vmem [shape: f32[64,32], index: 1, kind: input, shape index: {}]   ;;  %s95_s2 = inlined_call_operand.hbm [shape: f32[8,64], index: 2, kind: output, shape index: {}]  }
   0x1   :  { %v12_v0 = vld [vmem:[%s94_s1] sm:$0xff] }
   0x2   :  { %7 = vsyncpa [#allocation3], 0  ;;  %s67_s11 = smov 32   ;;  %vm17_vm0 = vcmask 261120   ;;  %v19_v1 = vld [vmem:[%s93_s0] sm:$0xff]  ;;  %s68_s14 = smov [#allocation2]  }
   0x3   :  { %14 = vrot.lane.b32.xlu0 %v12_v0, %s67_s11  ;;  %s28_s15 = sshll.u32 %s68_s14, 4  ;;  %s30_s18 = sshll.u32 %s95_s2, 4  ;;  %vm21_vm1 = vcmask 523264   ;;  %s29_s15 = int_to_ptr.vmem [resolvable:$true] %s28_s15  ;;  %s31_s18 = int_to_ptr.hbm [resolvable:$true] %s30_s18 }
  0x75   :  { %v15_v2 = vpop.permute.xlu0 %14 }
  0x76   :  { %v18_v3 = vsel %vm17_vm0, %v12_v0, %v15_v2 }
  0x77   :  { %v20_v4 = vadd.f32 %v19_v1, %v18_v3 }
  0x79   :  { %22 = vst.msk [vmem:[#allocation2] sm:$0xff] %vm21_vm1, %v20_v4 }
  0x7a   :  { %33 = dma.vmem_to_hbm [thread:$0]  %s29_s15, 128, %s31_s18, [#allocation3]  }
  0x7b   :  { %65 = dma.done.wait [#allocation3], 128  }
  0x7c   :  { %66 = vsyncadd [#allocation3], 4294967168 }
  0x7d   :  { %38 = vsyncpa [#allocation3], 1 }

</bundles_post_ra>
